<compile_context>
chip_gen: v7x
topology: tpu7x:2x2x1
jax: 0.10.0
libtpu: 0.0.40
codegen_flags: <defaults>
</compile_context>

<pallas_src>
import jax
import jax.numpy as jnp
from jax import lax
from jax.experimental import pallas as pl
from jax.experimental.pallas import tpu as pltpu

_EPS = 1e-5


def head_kernel(patches_ref, w1_ref, s1_ref, w2_ref, s2_ref, w3_ref, b3_ref,
                out_ref):
    # patches_ref: (9*C, TP)      bf16  im2col columns (pixels on lane axis)
    # w1_ref     : (midp, 9*C)    bf16  conv3x3 weights, BN1 scale folded in
    # s1_ref     : (midp, 1)      f32   BN1 shift
    # w2_ref     : (4*midp, midp) bf16  ConvT#1 taps stacked, BN2 scale folded
    # s2_ref     : (4*midp, 1)    f32   BN2 shift (ConvT#1 bias folded in)
    # w3_ref     : (16, 4*midp)   bf16  ConvT#2 block-diagonal tap matrix
    # b3_ref     : (1,)           f32   ConvT#2 bias (SMEM scalar)
    # out_ref    : (16, TP)       f32   16 = 4x4 depth-to-space sub-positions
    h1 = jnp.dot(w1_ref[...], patches_ref[...],
                 preferred_element_type=jnp.float32)
    h1 = jnp.maximum(h1 + s1_ref[...], 0.0)                    # BN1 shift + ReLU
    h1 = h1.astype(jnp.bfloat16)

    h2 = jnp.dot(w2_ref[...], h1, preferred_element_type=jnp.float32)
    h2 = jnp.maximum(h2 + s2_ref[...], 0.0)                    # BN2 shift + ReLU
    h2 = h2.astype(jnp.bfloat16)

    y = jnp.dot(w3_ref[...], h2, preferred_element_type=jnp.float32)
    y = y + b3_ref[0]
    # sigmoid: exp + reciprocal both on the EUP slot (frees VALU in epilogue)
    out_ref[...] = pl.reciprocal(1.0 + jnp.exp(-y), approx=True)


def _round_up(v, m):
    return ((v + m - 1) // m) * m


def _pick_tp(P, C, midp):
    """Largest lane tile fitting a cross-generation VMEM budget, grid >= 2."""
    budget = 16 * 1024 * 1024                       # < v5e 16 MiB? use w/ 32 MiB limit
    weights = ((midp * 9 * C + 4 * midp * midp + 16 * 4 * midp) * 2
               + (midp + 4 * midp) * 4)
    tp = 128
    for cand in (2048, 1024, 512, 256, 128):
        patches_b = 2 * 9 * C * cand * 2            # bf16, double-buffered
        out_b = 2 * 16 * cand * 4                   # f32, double-buffered
        interm = (midp + 4 * midp) * cand * (4 + 2)  # h1/h2 f32 + bf16 copies
        if weights + patches_b + out_b + interm <= budget:
            tp = cand
            break
    # keep >= 2 grid steps when possible (pipelining + v7x 2-TC megacore)
    while tp > 128 and pl.cdiv(P, tp) < 2:
        tp //= 2
    return tp


def head_forward(x_nchw, params):
    """Pallas implementation of Head.forward. Input NCHW, output (N,1,4H,4W)."""
    (w1, bn1_g, bn1_b, bn1_m, bn1_v,
     w2, b2, bn2_g, bn2_b, bn2_m, bn2_v,
     w3, b3) = params
    N, C, H, W = x_nchw.shape
    mid = w1.shape[0]
    midp = _round_up(mid, 8)                       # sublane-pad hidden channels
    P = N * H * W                                  # fused pixel axis (lanes)
    TP = _pick_tp(P, C, midp)
    P_pad = _round_up(P, TP)                       # lane-dense, pipelined tiles

    # ---- im2col, channel-major: (9*C, N*H*W); row order (ky, kx, c) ----------
    # cast to bf16 BEFORE the pad/stack/transpose: halves the wrapper-side
    # HBM traffic of the im2col shuffle.
    xb = x_nchw.astype(jnp.bfloat16)
    xpad = jnp.pad(xb, ((0, 0), (0, 0), (1, 1), (1, 1)))
    taps = [xpad[:, :, ky:ky + H, kx:kx + W]
            for ky in range(3) for kx in range(3)]
    patches = jnp.stack(taps, axis=1)                          # (N, 9, C, H, W)
    patches = patches.reshape(N, 9 * C, H * W)
    patches = patches.transpose(1, 0, 2).reshape(9 * C, P)
    if P_pad != P:
        patches = jnp.pad(patches, ((0, 0), (0, P_pad - P)))

    # ---- stage 1: conv3x3 weights with BN1 scale folded -----------------------
    scale1 = bn1_g / jnp.sqrt(bn1_v + _EPS)
    shift1 = bn1_b - bn1_m * scale1                            # conv1 has no bias
    w1f = w1.transpose(0, 2, 3, 1).reshape(mid, 9 * C) * scale1[:, None]
    w1f_p = jnp.zeros((midp, 9 * C), jnp.float32).at[:mid].set(w1f)
    s1_p = jnp.zeros((midp, 1), jnp.float32).at[:mid, 0].set(shift1)
    w1f_p = w1f_p.astype(jnp.bfloat16)

    # ---- stage 2: ConvT 2x2 s2 as 4 stacked 1x1 convs, BN2 + bias folded ------
    scale2 = bn2_g / jnp.sqrt(bn2_v + _EPS)
    shift2 = bn2_b + (b2 - bn2_m) * scale2
    w2f_p = jnp.zeros((4 * midp, midp), jnp.float32)
    s2_p = jnp.zeros((4 * midp, 1), jnp.float32)
    for tap, (a, b) in enumerate([(0, 0), (0, 1), (1, 0), (1, 1)]):
        blk = w2[:, :, a, b].T * scale2[:, None]               # (out=mid, in=mid)
        w2f_p = w2f_p.at[tap * midp:tap * midp + mid, :mid].set(blk)
        s2_p = s2_p.at[tap * midp:tap * midp + mid, 0].set(shift2)
    w2f_p = w2f_p.astype(jnp.bfloat16)

    # ---- stage 3: ConvT 2x2 s2 -> 1 channel, block-diagonal (16, 4*midp) ------
    w3f_p = jnp.zeros((16, 4 * midp), jnp.float32)
    for r in range(4):
        for c in range(4):
            tap = (r // 2) * 2 + (c // 2)
            w3f_p = w3f_p.at[r * 4 + c, tap * midp:tap * midp + mid].set(
                w3[:, 0, r % 2, c % 2])
    w3f_p = w3f_p.astype(jnp.bfloat16)
    b3_s = b3.reshape(1).astype(jnp.float32)                   # SMEM scalar

    out_flat = pl.pallas_call(
        head_kernel,
        out_shape=jax.ShapeDtypeStruct((16, P_pad), jnp.float32),
        grid_spec=pltpu.PrefetchScalarGridSpec(
            num_scalar_prefetch=0,
            grid=(P_pad // TP,),
            in_specs=[
                # patches is the only streamed operand; weights are pinned
                # (constant index_map -> no per-step re-copy).
                # TODO(synk): pipeline_mode=pl.Buffered(3) here if DMA is still
                # exposed after the larger TP (check v5e/v7x VMEM headroom).
                pl.BlockSpec((9 * C, TP), lambda t: (0, t)),
                pl.BlockSpec((midp, 9 * C), lambda t: (0, 0)),
                pl.BlockSpec((midp, 1), lambda t: (0, 0)),
                pl.BlockSpec((4 * midp, midp), lambda t: (0, 0)),
                pl.BlockSpec((4 * midp, 1), lambda t: (0, 0)),
                pl.BlockSpec((16, 4 * midp), lambda t: (0, 0)),
                pl.BlockSpec(memory_space=pltpu.MemorySpace.SMEM),
            ],
            out_specs=pl.BlockSpec((16, TP), lambda t: (0, t)),
        ),
        compiler_params=pltpu.CompilerParams(
            dimension_semantics=("parallel",),
            vmem_limit_bytes=32 * 1024 * 1024),
    )(patches, w1f_p, s1_p, w2f_p, s2_p, w3f_p, b3_s)

    out_flat = out_flat[:, :P]                                 # drop lane padding
    # depth-to-space: (16, N*H*W) -> (N, 1, 4H, 4W);  out[n, 4i+r, 4j+c]
    out = out_flat.reshape(4, 4, N, H, W)                      # (r, c, n, i, j)
    out = out.transpose(2, 3, 0, 4, 1).reshape(N, 4 * H, 4 * W)
    out = out[:, None, :, :]
    return out, []                                             # (x, features)


# ----------------------------- plain-JAX reference -----------------------------
def _bn(x, g, b, m, v):
    s = g / jnp.sqrt(v + _EPS)
    return x * s[None, :, None, None] + (b - m * s)[None, :, None, None]


def _convT2x2_s2(x, w, bias):
    # x: (N, Cin, H, W); w: (Cin, Cout, 2, 2)  (torch ConvTranspose2d layout)
    y = jnp.einsum('ncij,coab->noiajb', x, w)                  # (N,Co,H,2,W,2)
    n, co, h, _, ww, _ = y.shape
    return y.reshape(n, co, 2 * h, 2 * ww) + bias[None, :, None, None]


def _reference_forward(x, params):
    (w1, bn1_g, bn1_b, bn1_m, bn1_v,
     w2, b2, bn2_g, bn2_b, bn2_m, bn2_v,
     w3, b3) = params
    y = lax.conv_general_dilated(x, w1, (1, 1), ((1, 1), (1, 1)),
                                 dimension_numbers=("NCHW", "OIHW", "NCHW"))
    y = jnp.maximum(_bn(y, bn1_g, bn1_b, bn1_m, bn1_v), 0.0)
    y = jnp.maximum(_bn(_convT2x2_s2(y, w2, b2),
                        bn2_g, bn2_b, bn2_m, bn2_v), 0.0)
    y = jax.nn.sigmoid(_convT2x2_s2(y, w3, b3))
    return y, []


def make_params(key, in_ch):
    """Deterministic synthetic parameters matching Head.__init__ shapes."""
    mid = in_ch // 4
    k = jax.random.split(key, 12)
    w1 = 0.1 * jax.random.normal(k[0], (mid, in_ch, 3, 3), jnp.float32)  # OIHW
    bn1_g = 1.0 + 0.05 * jax.random.normal(k[1], (mid,), jnp.float32)
    bn1_b = 0.05 * jax.random.normal(k[2], (mid,), jnp.float32)
    bn1_m = 0.05 * jax.random.normal(k[3], (mid,), jnp.float32)
    bn1_v = 1.0 + 0.1 * jax.random.uniform(k[4], (mid,), jnp.float32)
    w2 = 0.1 * jax.random.normal(k[5], (mid, mid, 2, 2), jnp.float32)    # (in,out,kh,kw)
    b2 = 0.05 * jax.random.normal(k[6], (mid,), jnp.float32)
    bn2_g = 1.0 + 0.05 * jax.random.normal(k[7], (mid,), jnp.float32)
    bn2_b = 0.05 * jax.random.normal(k[8], (mid,), jnp.float32)
    bn2_m = 0.05 * jax.random.normal(k[9], (mid,), jnp.float32)
    bn2_v = 1.0 + 0.1 * jax.random.uniform(k[10], (mid,), jnp.float32)
    w3 = 0.1 * jax.random.normal(k[11], (mid, 1, 2, 2), jnp.float32)     # (in,1,kh,kw)
    b3 = jnp.array([0.01], jnp.float32)
    return (w1, bn1_g, bn1_b, bn1_m, bn1_v,
            w2, b2, bn2_g, bn2_b, bn2_m, bn2_v, w3, b3)


if __name__ == "__main__":
    key = jax.random.PRNGKey(0)
    kx, kp = jax.random.split(key)

    N, in_ch, H, W = 2, 32, 16, 16          # Head needs in_ch % 4 == 0
    x = jax.random.normal(kx, (N, in_ch, H, W), jnp.float32)    # NCHW
    params = make_params(kp, in_ch)

    out, feats = head_forward(x, params)
    jax.block_until_ready(out)

    ref, _ = _reference_forward(x, params)
    assert out.shape == (N, 1, 4 * H, 4 * W)
    assert feats == []
    # bf16 matmul operands (f32 accumulation) -> tolerance loosened vs f32 ref
    assert jnp.allclose(out, ref, atol=1e-2, rtol=1e-2)

    print("KERNEL_OK")
</pallas_src>

<mosaic_0001>
module attributes {stable_mosaic.version = 11 : i64} {
  func.func @head_kernel(%arg0: i32, %arg1: memref<288x256xbf16, #tpu.memory_space<vmem>>, %arg2: memref<8x288xbf16, #tpu.memory_space<vmem>>, %arg3: memref<8x1xf32, #tpu.memory_space<vmem>>, %arg4: memref<32x8xbf16, #tpu.memory_space<vmem>>, %arg5: memref<32x1xf32, #tpu.memory_space<vmem>>, %arg6: memref<16x32xbf16, #tpu.memory_space<vmem>>, %arg7: memref<1xf32, #tpu.memory_space<smem>>, %arg8: memref<16x256xf32, #tpu.memory_space<vmem>>) attributes {dimension_semantics = [#tpu.dimension_semantics<parallel>], iteration_bounds = array<i64: 2>, scalar_prefetch = 0 : i64, scratch_operands = 0 : i64, tpu.core_type = #tpu.core_type<tc>, window_params = [{transform_indices = @transform_0, window_bounds = array<i64: 288, 256>}, {pipeline_mode = #tpu.pipeline_mode<synchronous>, transform_indices = @transform_1, window_bounds = array<i64: 8, 288>}, {pipeline_mode = #tpu.pipeline_mode<synchronous>, transform_indices = @transform_2, window_bounds = array<i64: 8, 1>}, {pipeline_mode = #tpu.pipeline_mode<synchronous>, transform_indices = @transform_3, window_bounds = array<i64: 32, 8>}, {pipeline_mode = #tpu.pipeline_mode<synchronous>, transform_indices = @transform_4, window_bounds = array<i64: 32, 1>}, {pipeline_mode = #tpu.pipeline_mode<synchronous>, transform_indices = @transform_5, window_bounds = array<i64: 16, 32>}, {transform_indices = @transform_6, window_bounds = array<i64: 1>}, {transform_indices = @transform_7, window_bounds = array<i64: 16, 256>}]} {
    %c0 = arith.constant 0 : index
    %c0_0 = arith.constant 0 : index
    %0 = vector.load %arg2[%c0, %c0_0] : memref<8x288xbf16, #tpu.memory_space<vmem>>, vector<8x288xbf16>
    %c0_1 = arith.constant 0 : index
    %c0_2 = arith.constant 0 : index
    %1 = vector.load %arg1[%c0_1, %c0_2] : memref<288x256xbf16, #tpu.memory_space<vmem>>, vector<288x256xbf16>
    %cst = arith.constant dense<0.000000e+00> : vector<8x256xf32>
    %2 = tpu.matmul %0, %1, %cst {dimension_numbers = #tpu.dot_dimension_numbers<[1], [0], [0], [1], [0, 0, 1, 1], [], []>} : vector<8x288xbf16>, vector<288x256xbf16>, vector<8x256xf32> -> vector<8x256xf32>
    %c0_3 = arith.constant 0 : index
    %c0_4 = arith.constant 0 : index
    %3 = vector.load %arg3[%c0_3, %c0_4] : memref<8x1xf32, #tpu.memory_space<vmem>>, vector<8x1xf32>
    %4 = vector.broadcast %3 : vector<8x1xf32> to vector<8x256xf32>
    %5 = arith.addf %2, %4 : vector<8x256xf32>
    %cst_5 = arith.constant 0.000000e+00 : f32
    %6 = vector.broadcast %cst_5 : f32 to vector<8x256xf32>
    %7 = arith.maximumf %5, %6 : vector<8x256xf32>
    %8 = arith.truncf %7 : vector<8x256xf32> to vector<8x256xbf16>
    %c0_6 = arith.constant 0 : index
    %c0_7 = arith.constant 0 : index
    %9 = vector.load %arg4[%c0_6, %c0_7] : memref<32x8xbf16, #tpu.memory_space<vmem>>, vector<32x8xbf16>
    %cst_8 = arith.constant dense<0.000000e+00> : vector<32x256xf32>
    %10 = tpu.matmul %9, %8, %cst_8 {dimension_numbers = #tpu.dot_dimension_numbers<[1], [0], [0], [1], [0, 0, 1, 1], [], []>} : vector<32x8xbf16>, vector<8x256xbf16>, vector<32x256xf32> -> vector<32x256xf32>
    %c0_9 = arith.constant 0 : index
    %c0_10 = arith.constant 0 : index
    %11 = vector.load %arg5[%c0_9, %c0_10] : memref<32x1xf32, #tpu.memory_space<vmem>>, vector<32x1xf32>
    %12 = vector.broadcast %11 : vector<32x1xf32> to vector<32x256xf32>
    %13 = arith.addf %10, %12 : vector<32x256xf32>
    %cst_11 = arith.constant 0.000000e+00 : f32
    %14 = vector.broadcast %cst_11 : f32 to vector<32x256xf32>
    %15 = arith.maximumf %13, %14 : vector<32x256xf32>
    %16 = arith.truncf %15 : vector<32x256xf32> to vector<32x256xbf16>
    %c0_12 = arith.constant 0 : index
    %c0_13 = arith.constant 0 : index
    %17 = vector.load %arg6[%c0_12, %c0_13] : memref<16x32xbf16, #tpu.memory_space<vmem>>, vector<16x32xbf16>
    %cst_14 = arith.constant dense<0.000000e+00> : vector<16x256xf32>
    %18 = tpu.matmul %17, %16, %cst_14 {dimension_numbers = #tpu.dot_dimension_numbers<[1], [0], [0], [1], [0, 0, 1, 1], [], []>} : vector<16x32xbf16>, vector<32x256xbf16>, vector<16x256xf32> -> vector<16x256xf32>
    %c0_15 = arith.constant 0 : index
    %19 = memref.load %arg7[%c0_15] : memref<1xf32, #tpu.memory_space<smem>>
    %20 = vector.broadcast %19 : f32 to vector<16x256xf32>
    %21 = arith.addf %18, %20 : vector<16x256xf32>
    %cst_16 = arith.constant 0.000000e+00 : f32
    %22 = vector.broadcast %cst_16 : f32 to vector<16x256xf32>
    %23 = arith.subf %22, %21 : vector<16x256xf32>
    %24 = math.exp %23 : vector<16x256xf32>
    %cst_17 = arith.constant 1.000000e+00 : f32
    %25 = vector.broadcast %cst_17 : f32 to vector<16x256xf32>
    %26 = arith.addf %25, %24 : vector<16x256xf32>
    %27 = tpu.reciprocal %26 {approx = true} : vector<16x256xf32> -> vector<16x256xf32>
    %c0_18 = arith.constant 0 : index
    %c0_19 = arith.constant 0 : index
    %28 = vector.load %arg8[%c0_18, %c0_19] : memref<16x256xf32, #tpu.memory_space<vmem>>, vector<16x256xf32>
    tpu.vector_store %arg8[%c0_18, %c0_19], %27 {strides = array<i32>} : memref<16x256xf32, #tpu.memory_space<vmem>>, vector<16x256xf32>,
    return
  }
  func.func @transform_0(%arg0: i32) -> (i32, i32) {
    %c0_i32 = arith.constant 0 : i32
    %c0_i32_0 = arith.constant 0 : i32
    return %c0_i32, %arg0 : i32, i32
  }
  func.func @transform_1(%arg0: i32) -> (i32, i32) {
    %c0_i32 = arith.constant 0 : i32
    %c0_i32_0 = arith.constant 0 : i32
    %c0_i32_1 = arith.constant 0 : i32
    return %c0_i32, %c0_i32_0 : i32, i32
  }
  func.func @transform_2(%arg0: i32) -> (i32, i32) {
    %c0_i32 = arith.constant 0 : i32
    %c0_i32_0 = arith.constant 0 : i32
    %c0_i32_1 = arith.constant 0 : i32
    return %c0_i32, %c0_i32_0 : i32, i32
  }
  func.func @transform_3(%arg0: i32) -> (i32, i32) {
    %c0_i32 = arith.constant 0 : i32
    %c0_i32_0 = arith.constant 0 : i32
    %c0_i32_1 = arith.constant 0 : i32
    return %c0_i32, %c0_i32_0 : i32, i32
  }
  func.func @transform_4(%arg0: i32) -> (i32, i32) {
    %c0_i32 = arith.constant 0 : i32
    %c0_i32_0 = arith.constant 0 : i32
    %c0_i32_1 = arith.constant 0 : i32
    return %c0_i32, %c0_i32_0 : i32, i32
  }
  func.func @transform_5(%arg0: i32) -> (i32, i32) {
    %c0_i32 = arith.constant 0 : i32
    %c0_i32_0 = arith.constant 0 : i32
    %c0_i32_1 = arith.constant 0 : i32
    return %c0_i32, %c0_i32_0 : i32, i32
  }
  func.func @transform_6(%arg0: i32) -> i32 {
    %c0_i32 = arith.constant 0 : i32
    %c0_i32_0 = arith.constant 0 : i32
    return %c0_i32 : i32
  }
  func.func @transform_7(%arg0: i32) -> (i32, i32) {
    %c0_i32 = arith.constant 0 : i32
    %c0_i32_0 = arith.constant 0 : i32
    return %c0_i32, %arg0 : i32, i32
  }
}

</mosaic_0001>

<bundles_post_ra>
// kernel: tpu_custom_call.1
= control target key start
LH: loop header
LB: loop body
LE: loop exit
PB: predicated region body
PF: predicated region fallthrough
CT: control target
= control target key end

     0   :  { %s1491_s0 = inlined_call_operand.hbm [shape: bf16[288,512], index: 0, kind: input, shape index: {}]   ;;  %s1492_s1 = inlined_call_operand.vmem [shape: bf16[8,288], index: 1, kind: input, shape index: {}]   ;;  %s1493_s2 = inlined_call_operand.vmem [shape: f32[8,1], index: 2, kind: input, shape index: {}]   ;;  %s1494_s3 = inlined_call_operand.vmem [shape: bf16[32,8], index: 3, kind: input, shape index: {}]   ;;  %s1495_s4 = inlined_call_operand.vmem [shape: f32[32,1], index: 4, kind: input, shape index: {}]   ;;  %s1496_s5 = inlined_call_operand.vmem [shape: bf16[16,32], index: 5, kind: input, shape index: {}]   ;;  %s1497_s6 = inlined_call_operand.<no memory space> [shape: f32[1], index: 6, kind: input, shape index: {}]   ;;  %s1498_s7 = inlined_call_operand.hbm [shape: f32[16,512], index: 7, kind: output, shape index: {}]  }
   0x1   :  { %12 = sst [smem:[#allocation2]] %s1497_s6 }
   0x2   :  { %13 = vsyncpa [#allocation4], 0 }
   0x3   :  { %15 = vsyncpa [#allocation4 + $0x1], 0 }
   0x4   :  { %16 = vsyncpa [#allocation5], 0 }
   0x5   :  { %18 = vsyncpa [#allocation5 + $0x1], 0  ;;  %s1256_s26 = smov 0   ;;  %s1258_s27 = smov 0  }
   0x6   :  { %s1260_s28 = smov 0   ;;  %s1262_s29 = smov 0  }
   0x7 LB: > { %s1277_s6 = sadd.s32 4294967295, %s1202_s29   ;;  %s908_s30 = sadd.s32 4294967294, %s1202_s29   ;;  %s1202_s29 = sphi %s1262_s29, %s1511_s29   ;;  %s1198_s28 = sphi %s1260_s28, %s1510_s28   ;;  %s1194_s27 = sphi %s1258_s27, %s1509_s27   ;;  %s1190_s26 = sphi %s1256_s26, %s1508_s26  }
   0x8   : > { %s1281_s8 = sadd.s32 1, %s1202_s29   ;;  %s31_s9 = sadd.s32 1, %s1198_s28 }
   0x9   : > { %s28_s10 = ssub.s32 %s1202_s29, %s1281_s8  ;;  %p38_p0 = scmp.ne.s32.totalorder %s1198_s28, %s1194_s27 }
   0xa   : > { %p29_p1 = scmp.eq.s32.totalorder %s28_s10, 0  ;;  %p39_p2 = scmp.eq.s32.totalorder %s1202_s29, 0 }
   0xb   : > { %p44_p3 = scmp.ne.s32.totalorder %s1194_s27, %s1190_s26  ;;  %p45_p4 = scmp.eq.s32.totalorder %s1277_s6, 0 }
   0xc   : > { %s1293_s11 = scalar_select %p29_p1, %s1198_s28, %s31_s9  }
   0xd   : > { %p40_p5 = por %p39_p2, %p38_p0  ;;  %p1295_p6 = por %p45_p4, %p44_p3 }
   0xe   : > { %p194_p7 = scmp.eq.s32.totalorder %s1277_s6, 1  ;;  %p200_p8 = scmp.eq.s32.totalorder %s908_s30, 1 }
   0xf   : > { %p987_p10 = scmp.lt.s32.totalorder %s1202_s29, 2  ;;  %s238_s15 = sand.u32 1, %s1198_s28  }
  0x10   : > { %p1302_p11 = por %p194_p7, %p38_p0  ;;  %p1306_p12 = por %p200_p8, %p44_p3 }
  0x11   : > { %s967_s16 = sshll.u32 %s1202_s29, 7  ;;  %s973_s17 = smul.u32 288, %s238_s15 }
  0x12   : > { %s1501_s13 = scalar_select %p1302_p11, 1, 0 }
  0x13   : > { %s1502_s14 = scalar_select %p1306_p12, 1, 0 }
  0x14   : > { %s1315_s20 = scalar_lea.hbm %s1491_s0, %s967_s16  ;;  %p1317_p13 = pnand %p987_p10, %p40_p5 }
  0x15   : > { %s242_s22 = scalar_lea.vmem [#allocation3], %s973_s17  ;;  %s1324_s24 = scalar_lea.sflag [#allocation4], %s238_s15 }
  0x16   : > { %s249_s23 = sshll.u32 %s242_s22, 4  ;;  %s1106_s25 = scalar_lea.hbm %s1315_s20, 4608  ;;  %s1321_s23 = int_to_ptr.vmem [resolvable:$true] %s249_s23 }
  0x17   : > { %p1107_p1 = scmp.ne.s32.totalorder %s1315_s20, %s1106_s25  ;;  %p1108_p2 = pneg %p1317_p13 }
  0x18   : > { %s1111_s10 = scalar_lea.hbm %s1491_s0, 9216  ;;  %p1112_p5 = scmp.lt.u32.totalorder %s1315_s20, %s1491_s0 }
  0x19   : > { %p1109_p3 = pnand %p1108_p2, %p1107_p1  ;;  %p1113_p7 = scmp.lt.u32.totalorder %s1111_s10, %s1106_s25 }
  0x1a   : > { %p1115_p10 = scmp.lt.u32.totalorder %s1106_s25, %s1315_s20 }
  0x1b   : > { %p1110_p4 = pneg %p1109_p3  ;;  %p1114_p8 = por %p1113_p7, %p1112_p5 }
  0x1d   : > { %p1116_p9 = por %p1115_p10, %p1114_p8 }
  0x1f   : > { %p1117_p0 = pnand %p1116_p9, %p1110_p4 }
  0x21   : > { %1120 = shalt.err (!%p1117_p0)
}
  0x22   : > { %s1121_s15 = scalar_lea.vmem %s1321_s23, 4608  ;;  %s1204_s18 = smov [#allocation3]  }
  0x23   : > { %p1122_p1 = scmp.ne.s32.totalorder %s1321_s23, %s1121_s15  ;;  %s1126_s19 = sshll.u32 %s1204_s18, 4  ;;  %s1127_s19 = int_to_ptr.vmem [resolvable:$false] %s1126_s19 }
  0x24   : > { %s1128_s22 = scalar_lea.vmem %s1127_s19, 9216  ;;  %p1129_p11 = scmp.lt.s32.totalorder %s1321_s23, %s1127_s19 }
  0x25   : > { %p1124_p3 = pnand %p1122_p1, %p1108_p2  ;;  %p1130_p5 = scmp.lt.s32.totalorder %s1128_s22, %s1121_s15 }
  0x27   : > { %p1125_p12 = pneg %p1124_p3  ;;  %p1131_p7 = por %p1130_p5, %p1129_p11 }
  0x29   : > { %p1132_p8 = pnand %p1131_p7, %p1125_p12 }
  0x2b   : > { %1135 = shalt.err (!%p1132_p8)
}
  0x2c   : > { %s1205_s25 = smov 256   ;;  %s1206_s30 = smov 128  }
  0x2d   : > { %s1207_s9 = smov 8   ;;  %p257_p9 = scmp.lt.s32.totalorder %s1202_s29, 3 }
  0x2e   : > { %982 = dma.hbm_to_vmem [thread:$0]  (!%p1317_p13), %s1315_s20, 4608, %s1321_s23, %s1324_s24, %s1205_s25, %s1206_s30, %s1207_s9  }
  0x2f   : > { %p1504_p0 = scmp.ge.s32.totalorder %s1202_s29, 1 }
  0x31   : > { %p258_p2 = pnand %p1504_p0, %p257_p9 }
  0x32   : > { %s1356_s10 = sand.u32 (!%p258_p2), 1, %s1194_s27  }
  0x33   : > { %261 = sbr.rel (%p258_p2) target bundleno = 844 (0x34c), region = 48  ;;  %s264_s17 = scalar_lea.sflag (!%p258_p2), [#allocation4], %s1356_s10 }
  0x34   : > { %s974_s16 = smul.u32 (!%p258_p2), 288, %s1356_s10 }
  0x36   : > { %s1360_s15 = scalar_lea.vmem (!%p258_p2), [#allocation3], %s974_s16 }
  0x3a   : > { %1181 = dma.done.wait (%p1295_p6), %s264_s17, 4608  }
  0x3b   : > { %1183 = vsyncadd (%p1295_p6), %s264_s17, 4294962688  ;;  %v1208_v0 = vmov 0   ;;  %v1030_v1 = vld [vmem:[%s1360_s15 + $0x4] ss:$8 sps:$4 sm:$0xff]   ;;  %v1032_v2 = vld [vmem:[%s1360_s15] ss:$8 sps:$4 sm:$0xff]  }
  0x3c   : > { %612 = vmatprep.mubr.bf16.mxu1 %v1208_v0  ;;  %1028 = vset.pattern.permute.xlu0 %v1208_v0  ;;  %v1033_v3 = vld [vmem:[%s1360_s15 + $0x14] ss:$8 sps:$4 sm:$0xff]   ;;  %v1035_v4 = vld [vmem:[%s1360_s15 + $0x10] ss:$8 sps:$4 sm:$0xff]   ;;  %v1036_v5 = vld [vmem:[%s1360_s15 + $0x24] ss:$8 sps:$4 sm:$0xff]  }
  0x3d   : > { %1029 = vset.pattern.permute.xlu1 %v1208_v0  ;;  %539 = vmatprep.subr.bf16.mxu0 %v1030_v1  ;;  %v1038_v6 = vld [vmem:[%s1360_s15 + $0x20] ss:$8 sps:$4 sm:$0xff]   ;;  %v1039_v7 = vld [vmem:[%s1360_s15 + $0x34] ss:$8 sps:$4 sm:$0xff]   ;;  %v1041_v8 = vld [vmem:[%s1360_s15 + $0x30] ss:$8 sps:$4 sm:$0xff]  }
  0x3e   : > { %540 = vmatpush1.bf16.msra.mxu0 %v1032_v2  ;;  %v1042_v9 = vld [vmem:[%s1360_s15 + $0x44] ss:$8 sps:$4 sm:$0xff]   ;;  %v1044_v10 = vld [vmem:[%s1360_s15 + $0x40] ss:$8 sps:$4 sm:$0xff]   ;;  %v1045_v11 = vld [vmem:[%s1360_s15 + $0x54] ss:$8 sps:$4 sm:$0xff]  }
  0x3f   : > { %541 = vmatprep.subr.bf16.mxu0 %v1033_v3  ;;  %v1047_v12 = vld [vmem:[%s1360_s15 + $0x50] ss:$8 sps:$4 sm:$0xff]   ;;  %v1072_v13 = vld [vmem:[%s1360_s15 + $0x104] ss:$8 sps:$4 sm:$0xff]   ;;  %v1076_v15 = vld [vmem:[%s1360_s15 + $0x100] ss:$8 sps:$4 sm:$0xff]  }
  0x40   : > { %v1048_v14 = vld [vmem:[%s1360_s15 + $0x64] ss:$8 sps:$4 sm:$0xff]   ;;  %580 = vmatprep.subr.bf16.mxu1 %v1072_v13  ;;  %v1078_v16 = vld [vmem:[%s1360_s15 + $0x114] ss:$8 sps:$4 sm:$0xff]   ;;  %v1050_v17 = vld [vmem:[%s1360_s15 + $0x60] ss:$8 sps:$4 sm:$0xff]  }
  0x41   : > { %581 = vmatpush1.bf16.msra.mxu1 %v1076_v15  ;;  %v1082_v18 = vld [vmem:[%s1360_s15 + $0x110] ss:$8 sps:$4 sm:$0xff]   ;;  %v1051_v19 = vld [vmem:[%s1360_s15 + $0x74] ss:$8 sps:$4 sm:$0xff]   ;;  %v301_v20 = vld [vmem:[%s1492_s1] sm:$0xff]  ;;  %vm535_vm0 = vcmask 261120  }
  0x42   : > { %542 = vmatpush1.bf16.msra.mxu0 %v1035_v4  ;;  %582 = vmatprep.subr.bf16.mxu1 %v1078_v16  ;;  %v1053_v21 = vld [vmem:[%s1360_s15 + $0x70] ss:$8 sps:$4 sm:$0xff]   ;;  %v916_v22 = vcombine.high %v301_v20, %v301_v20  ;;  %v1086_v23 = vld [vmem:[%s1492_s1 + $0x8] ss:$0 sps:$4 sm:$0xff]   ;;  %v339_v24 = vld [vmem:[%s1493_s2] sm:$0xff]  ;;  %v915_v43 = vcombine.low %v301_v20, %v301_v20  ;;  %vm670_vm1 = vcmask 1043456  }
  0x43   : > { %543 = vmatprep.subr.bf16.mxu0 %v1036_v5  ;;  %v629_v25 = vld [vmem:[%s1495_s4] sm:$0xff]  ;;  %342 = vperm.xlu0 %1028, %v339_v24   ;;  %v632_v28 = vld [vmem:[%s1495_s4 + $0x18] sm:$0xff]  ;;  %v630_v44 = vld [vmem:[%s1495_s4 + $0x8] sm:$0xff]  ;;  %vm663_vm2 = vcmask 64512   ;;  %s744_s19 = sld [smem:[#allocation2]]  ;;  %s914_s22 = sshll.u32 %s1356_s10, 5 }
  0x44   : > { %571 = vmatprep.mubr.bf16.mxu0 %v916_v22  ;;  %v1054_v26 = vld [vmem:[%s1360_s15 + $0x84] ss:$8 sps:$4 sm:$0xff]   ;;  %v1056_v27 = vld [vmem:[%s1360_s15 + $0x80] ss:$8 sps:$4 sm:$0xff]   ;;  %v1057_v29 = vld [vmem:[%s1360_s15 + $0x94] ss:$8 sps:$4 sm:$0xff]   ;;  %640 = vperm.xlu1 %1029, %v630_v44  }
  0x45   : > { %583 = vmatpush1.bf16.msra.mxu1 %v1082_v18  ;;  %v1059_v30 = vld [vmem:[%s1360_s15 + $0x90] ss:$8 sps:$4 sm:$0xff]   ;;  %v1060_v31 = vld [vmem:[%s1360_s15 + $0xa4] ss:$8 sps:$4 sm:$0xff]   ;;  %v1062_v32 = vld [vmem:[%s1360_s15 + $0xa0] ss:$8 sps:$4 sm:$0xff]  }
  0x46   : > { %544 = vmatpush1.bf16.msra.mxu0 %v1038_v6  ;;  %v1063_v33 = vld [vmem:[%s1360_s15 + $0xb4] ss:$8 sps:$4 sm:$0xff]   ;;  %v1065_v34 = vld [vmem:[%s1360_s15 + $0xb0] ss:$8 sps:$4 sm:$0xff]   ;;  %v1066_v35 = vld [vmem:[%s1360_s15 + $0xc4] ss:$8 sps:$4 sm:$0xff]  }
  0x47   : > { %545 = vmatprep.subr.bf16.mxu0 %v1039_v7  ;;  %635 = vperm.xlu0 %1028, %v629_v25   ;;  %v1068_v36 = vld [vmem:[%s1360_s15 + $0xc0] ss:$8 sps:$4 sm:$0xff]   ;;  %v1069_v37 = vld [vmem:[%s1360_s15 + $0xd4] ss:$8 sps:$4 sm:$0xff]   ;;  %v1071_v38 = vld [vmem:[%s1360_s15 + $0xd0] ss:$8 sps:$4 sm:$0xff]  }
  0x48   : > { %954 = vmatmul.mubr.msk.bf16.vlgmr.msra.gmra.mrb[0].mxu1 %vm535_vm0, %v1086_v23  ;;  %v1074_v39 = vld [vmem:[%s1360_s15 + $0xe4] ss:$8 sps:$4 sm:$0xff]   ;;  %v1077_v40 = vld [vmem:[%s1360_s15 + $0xe0] ss:$8 sps:$4 sm:$0xff]   ;;  %v1080_v41 = vld [vmem:[%s1360_s15 + $0xf4] ss:$8 sps:$4 sm:$0xff]  }
  0x49   : > { %709 = vmatprep.mubr.bf16.mxu1 %v1208_v0  ;;  %v1083_v42 = vld [vmem:[%s1360_s15 + $0xf0] ss:$8 sps:$4 sm:$0xff]   ;;  %v1087_v1 = vld [vmem:[%s1494_s3] sm:$0xff]   ;;  %v1088_v2 = vld [vmem:[%s1494_s3 + $0x8] sm:$0xff]   ;;  %s968_s25 = sshll.u32 %s1277_s6, 8  ;;  %s297_s30 = scalar_lea.vmem [#allocation6], %s914_s22 }
  0x4a   : > { %546 = vmatpush1.bf16.msra.mxu0 %v1041_v8  ;;  %v631_v45 = vld [vmem:[%s1495_s4 + $0x10] sm:$0xff]  ;;  %s835_s9 = sshll.u32 %s297_s30, 4  ;;  %s1445_s12 = scalar_lea.hbm %s1498_s7, %s968_s25  ;;  %s1447_s9 = int_to_ptr.vmem [resolvable:$true] %s835_s9 }
  0x4b   : > { %547 = vmatprep.subr.bf16.mxu0 %v1042_v9  ;;  %650 = vperm.xlu0 %1028, %v632_v28   ;;  %s822_s6 = scalar_lea.sflag [#allocation5], %s1356_s10  ;;  %s1136_s15 = scalar_lea.vmem %s1447_s9, 512 }
  0x4c   : > { %645 = vperm.xlu1 %1029, %v631_v45   ;;  %p1137_p6 = scmp.ne.s32.totalorder %s1447_s9, %s1136_s15  ;;  %p1505_p11 = scmp.ne.s32.totalorder %s1501_s13, 0 }
  0x4d   : > { %s1209_s20 = smov [#allocation6]  }
  0x4e   : > { %548 = vmatpush1.bf16.msra.mxu0 %v1044_v10  ;;  %p1138_p12 = pnand %p1137_p6, %p1505_p11  ;;  %s1140_s21 = sshll.u32 %s1209_s20, 4  ;;  %s1141_s21 = int_to_ptr.vmem [resolvable:$false] %s1140_s21 }
  0x4f   : > { %549 = vmatprep.subr.bf16.mxu0 %v1045_v11  ;;  %s1142_s23 = scalar_lea.vmem %s1141_s21, 1024  ;;  %p1143_p4 = scmp.lt.s32.totalorder %s1447_s9, %s1141_s21 }
  0x50   : > { %p1139_p13 = pneg %p1138_p12  ;;  %p1144_p10 = scmp.lt.s32.totalorder %s1142_s23, %s1136_s15 }
  0x52   : > { %550 = vmatpush1.bf16.msra.mxu0 %v1047_v12  ;;  %p1145_p1 = por %p1144_p10, %p1143_p4 }
  0x53   : > { %551 = vmatprep.subr.bf16.mxu0 %v1048_v14 }
  0x54   : > { %p1146_p3 = pnand %p1145_p1, %p1139_p13 }
  0x56   : > { %552 = vmatpush1.bf16.msra.mxu0 %v1050_v17 }
  0x57   : > { %553 = vmatprep.subr.bf16.mxu0 %v1051_v19 }
  0x5a   : > { %554 = vmatpush1.bf16.msra.mxu0 %v1053_v21 }
  0x5b   : > { %555 = vmatprep.subr.bf16.mxu0 %v1054_v26 }
  0x5e   : > { %556 = vmatpush1.bf16.msra.mxu0 %v1056_v27 }
  0x5f   : > { %557 = vmatprep.subr.bf16.mxu0 %v1057_v29 }
  0x62   : > { %558 = vmatpush1.bf16.msra.mxu0 %v1059_v30 }
  0x63   : > { %559 = vmatprep.subr.bf16.mxu0 %v1060_v31 }
  0x66   : > { %560 = vmatpush1.bf16.msra.mxu0 %v1062_v32 }
  0x67   : > { %561 = vmatprep.subr.bf16.mxu0 %v1063_v33 }
  0x6a   : > { %562 = vmatpush1.bf16.msra.mxu0 %v1065_v34  ;;  %v1089_v34 = vld [vmem:[%s1496_s5] sm:$0xff]  }
  0x6b   : > { %563 = vmatprep.subr.bf16.mxu0 %v1066_v35  ;;  %v745_v35 = vstv %s744_s19 }
  0x6e   : > { %564 = vmatpush1.bf16.msra.mxu0 %v1068_v36 }
  0x6f   : > { %565 = vmatprep.subr.bf16.mxu0 %v1069_v37 }
  0x72   : > { %566 = vmatpush1.bf16.msra.mxu0 %v1071_v38 }
  0x73   : > { %567 = vmatprep.subr.bf16.mxu0 %v1074_v39 }
  0x76   : > { %568 = vmatpush1.bf16.msra.mxu0 %v1077_v40 }
  0x77   : > { %569 = vmatprep.subr.bf16.mxu0 %v1080_v41 }
  0x7a   : > { %570 = vmatpush1.bf16.msra.mxu0 %v1083_v42 }
  0x7d   : > { %572 = vmatmul.mubr.bf16.vlgmr.msra.gmra.mrb[0].mxu0 %v915_v43 }
  0xc2   : > { %v343_v50 = vpop.permute.xlu0 %342 }
  0xc3   : > { %v641_v4 = vpop.permute.xlu1 %640 }
  0xc6   : > { %v636_v3 = vpop.permute.xlu0 %635 }
  0xca   : > { %v651_v22 = vpop.permute.xlu0 %650 }
  0xcb   : > { %v646_v16 = vpop.permute.xlu1 %645 }
 0x11b   : > { %v614_v46 = vpop.f32.mrb[0].mxu1 }
 0x11c   : > { %v616_v47 = vpop.f32.mrb[1].mxu1 }
 0x11d   : > { %v618_v48 = vpop.f32.mrb[2].mxu1 }
 0x11e   : > { %v619_v49 = vpop.f32.mrb[3].mxu1 }
 0x150   : > { %v573_v51 = vpop.f32.mrb[0].mxu0 }
 0x151   : > { %v574_v52 = vadd.f32 %v573_v51, %v343_v50  ;;  %v575_v53 = vpop.f32.mrb[1].mxu0 }
 0x152   : > { %v576_v54 = vadd.f32 %v575_v53, %v343_v50  ;;  %v577_v55 = vpop.f32.mrb[2].mxu0 }
 0x153   : > { %v615_v56 = vadd.f32 %v614_v46, %v574_v52  ;;  %v578_v57 = vpop.f32.mrb[3].mxu0 }
 0x154   : > { %v617_v58 = vadd.f32 %v616_v47, %v576_v54 }
 0x155   : > { %v621_v59 = vmax.f32 %v615_v56, 0.0 }
 0x156   : > { %v622_v60 = vmax.f32 %v617_v58, 0.0 }
 0x157   : > { %v623_v61 = vpack.c.bf16 %v621_v59, %v621_v59 }
 0x158   : > { %v624_v62 = vpack.c.bf16 %v622_v60, %v622_v60 }
 0x159   : > { %v672_v63 = vsel %vm670_vm1, %v623_v61, 0 }
 0x15a   : > { %957 = vmatprep.subr.msk.bf16.mxu1 %vm670_vm1, %v624_v62 }
 0x15b   : > { %678 = vmatpush1.bf16.msra.mxu1 %v672_v63 }
 0x15e   : > { %958 = vmatmul.mubr.msk.bf16.vlgmr.msra.gmra.mrb[4].mxu1 %vm663_vm2, %v1087_v1 }
 0x15f   : > { %719 = vmatprep.mubr.bf16.mxu1 %v1208_v0 }
 0x166   : > { %959 = vmatmul.mubr.msk.bf16.gmra.mrb[8].mxu1 %vm663_vm2, %v1088_v2 }
 0x167   : > { %786 = vmatprep.mubr.bf16.mxu1 %v1208_v0 }
 0x231   : > { %v711_v5 = vpop.f32.mrb[4].mxu1 }
 0x232   : > { %v712_v6 = vadd.f32 %v711_v5, %v636_v3  ;;  %v713_v7 = vpop.f32.mrb[5].mxu1 }
 0x233   : > { %v714_v8 = vadd.f32 %v713_v7, %v636_v3  ;;  %v715_v9 = vpop.f32.mrb[6].mxu1 }
 0x234   : > { %v716_v10 = vadd.f32 %v715_v9, %v641_v4  ;;  %v717_v11 = vpop.f32.mrb[7].mxu1  ;;  %v730_v13 = vmax.f32 %v712_v6, 0.0 }
 0x235   : > { %v718_v12 = vadd.f32 %v717_v11, %v641_v4  ;;  %v731_v15 = vmax.f32 %v714_v8, 0.0 }
 0x236   : > { %v732_v14 = vmax.f32 %v716_v10, 0.0 }
 0x237   : > { %v733_v17 = vmax.f32 %v718_v12, 0.0 }
 0x238   : > { %v738_v18 = vpack.c.bf16 %v732_v14, %v730_v13 }
 0x239   : > { %v739_v19 = vpack.c.bf16 %v733_v17, %v731_v15  ;;  %v721_v20 = vpop.f32.mrb[8].mxu1 }
 0x23a   : > { %v722_v21 = vadd.f32 %v721_v20, %v646_v16  ;;  %v723_v0 = vpop.f32.mrb[9].mxu1 }
 0x23b   : > { %v724_v23 = vadd.f32 %v723_v0, %v646_v16  ;;  %v725_v24 = vpop.f32.mrb[10].mxu1  ;;  %754 = vmatprep.subr.bf16.mxu1 %v739_v19 }
 0x23c   : > { %v726_v25 = vadd.f32 %v725_v24, %v651_v22  ;;  %v727_v26 = vpop.f32.mrb[11].mxu1  ;;  %755 = vmatpush1.bf16.msra.mxu1 %v738_v18  ;;  %v734_v28 = vmax.f32 %v722_v21, 0.0 }
 0x23d   : > { %v728_v27 = vadd.f32 %v727_v26, %v651_v22  ;;  %v735_v30 = vmax.f32 %v724_v23, 0.0 }
 0x23e   : > { %v736_v29 = vmax.f32 %v726_v25, 0.0 }
 0x23f   : > { %v737_v31 = vmax.f32 %v728_v27, 0.0 }
 0x240   : > { %v740_v32 = vpack.c.bf16 %v736_v29, %v734_v28 }
 0x241   : > { %v741_v33 = vpack.c.bf16 %v737_v31, %v735_v30 }
 0x243   : > { %756 = vmatprep.subr.bf16.mxu1 %v741_v33 }
 0x244   : > { %757 = vmatpush1.bf16.msra.mxu1 %v740_v32 }
 0x247   : > { %961 = vmatmul.mubr.msk.bf16.vlgmr.msra.gmra.mrb[12].mxu1 %vm535_vm0, %v1089_v34 }
 0x31a   : > { %v788_v36 = vpop.f32.mrb[12].mxu1 }
 0x31b   : > { %v789_v37 = vadd.f32 %v788_v36, %v745_v35  ;;  %v790_v38 = vpop.f32.mrb[13].mxu1 }
 0x31c   : > { %v791_v39 = vadd.f32 %v790_v38, %v745_v35  ;;  %v792_v40 = vpop.f32.mrb[14].mxu1 }
 0x31d   : > { %v797_v41 = vsub.f32 0.0, %v789_v37  ;;  %v793_v42 = vadd.f32 %v792_v40, %v745_v35  ;;  %v794_v43 = vpop.f32.mrb[15].mxu1 }
 0x31e   : > { %v798_v44 = vsub.f32 0.0, %v791_v39  ;;  %v795_v45 = vadd.f32 %v794_v43, %v745_v35 }
 0x31f   : > { %v801_v46 = vmul.f32 1.442695, %v797_v41  ;;  %v799_v47 = vsub.f32 0.0, %v793_v42 }
 0x320   : > { %v803_v48 = vmul.f32 1.442695, %v798_v44  ;;  %v800_v49 = vsub.f32 0.0, %v795_v45 }
 0x321   : > { %1090 = vpow2.f32 %v801_v46  ;;  %v805_v50 = vmul.f32 1.442695, %v799_v47 }
 0x322   : > { %1092 = vpow2.f32 %v803_v48  ;;  %v807_v51 = vmul.f32 1.442695, %v800_v49 }
 0x323   : > { %1094 = vpow2.f32 %v805_v50 }
 0x324   : > { %1096 = vpow2.f32 %v807_v51 }
 0x32b   : > { %v1091_v52 = vpop.eup %1090 }
 0x32c   : > { %v1093_v53 = vpop.eup %1092  ;;  %v809_v54 = vadd.f32 1.0, %v1091_v52 }
 0x32d   : > { %v1095_v55 = vpop.eup %1094  ;;  %v810_v56 = vadd.f32 1.0, %v1093_v53 }
 0x32e   : > { %v1097_v57 = vpop.eup %1096  ;;  %1098 = vrcp.f32 %v809_v54  ;;  %v811_v58 = vadd.f32 1.0, %v1095_v55 }
 0x32f   : > { %1100 = vrcp.f32 %v810_v56  ;;  %v812_v59 = vadd.f32 1.0, %v1097_v57 }
 0x330   : > { %1102 = vrcp.f32 %v811_v58 }
 0x331   : > { %1104 = vrcp.f32 %v812_v59 }
 0x338   : > { %v1099_v60 = vpop.eup %1098 }
 0x339   : > { %v1101_v61 = vpop.eup %1100  ;;  %817 = vst [vmem:[%s297_s30] sm:$0xff] %v1099_v60 }
 0x33a   : > { %v1103_v62 = vpop.eup %1102  ;;  %818 = vst [vmem:[%s297_s30 + $0x8] sm:$0xff] %v1101_v61 }
 0x33b   : > { %v1105_v63 = vpop.eup %1104  ;;  %819 = vst [vmem:[%s297_s30 + $0x10] sm:$0xff] %v1103_v62 }
 0x33c   : > { %820 = vst [vmem:[%s297_s30 + $0x18] sm:$0xff] %v1105_v63 }
 0x33d   : > { %1149 = shalt.err (!%p1146_p3)
}
 0x33e   : > { %s1150_s24 = scalar_lea.hbm %s1445_s12, 512  ;;  %s1154_s22 = scalar_lea.hbm %s1498_s7, 1024 }
 0x33f   : > { %p1151_p5 = scmp.ne.s32.totalorder %s1445_s12, %s1150_s24  ;;  %p1155_p9 = scmp.lt.u32.totalorder %s1445_s12, %s1498_s7 }
 0x340   : > { %p1156_p0 = scmp.lt.u32.totalorder %s1154_s22, %s1150_s24  ;;  %p1158_p6 = scmp.lt.u32.totalorder %s1150_s24, %s1445_s12 }
 0x341   : > { %p1152_p7 = pnand %p1151_p5, %p1505_p11 }
 0x342   : > { %p1157_p2 = por %p1156_p0, %p1155_p9 }
 0x343   : > { %p1153_p8 = pneg %p1152_p7 }
 0x344   : > { %p1159_p12 = por %p1158_p6, %p1157_p2 }
 0x346   : > { %p1160_p13 = pnand %p1159_p12, %p1153_p8 }
 0x348   : > { %1163 = shalt.err (!%p1160_p13)
}
 0x349   : > { %s1210_s16 = smov 256   ;;  %s1211_s17 = smov 512  }
 0x34a   : > { %s1212_s15 = smov 16  }
 0x34b   : > { %977 = dma.vmem_to_hbm [thread:$0]  (%p1505_p11), %s1447_s9, 512, %s1445_s12, %s822_s6, %s1210_s16, %s1211_s17, %s1212_s15  }
 0x34c PF: > { %s850_s20 = sand.u32 1, %s1190_s26   ;;  %p1506_p4 = scmp.ne.s32.totalorder %s1502_s14, 0 }
 0x34d   : > { %p1507_p10 = scmp.ge.s32.totalorder %s1202_s29, 2  ;;  %s851_s21 = scalar_lea.sflag [#allocation5], %s850_s20 }
 0x34f   : > { %p984_p1 = pnand %p1507_p10, %p1506_p4 }
 0x351   : > { %1185 = dma.done.wait (!%p984_p1), %s851_s21, 512  }
 0x352   : > { %1187 = vsyncadd (!%p984_p1), %s851_s21, 4294966784  ;;  %p21_p3 = scmp.ge.s32.totalorder %s1281_s8, 4   ;;  %s1508_s26 = smov %s1194_s27 }
 0x353   : > { %s1509_s27 = smov %s1198_s28  ;;  %s1510_s28 = smov %s1293_s11 }
 0x354   : > { %s1511_s29 = smov %s1281_s8  ;;  %23 = sbr.rel (!%p21_p3) target bundleno = 7 (0x7), region = 93 }
 0x35b   :  { %856 = vsyncpa [#allocation4], 1 }
 0x35c   :  { %858 = vsyncpa [#allocation4 + $0x1], 1 }
 0x35d   :  { %859 = vsyncpa [#allocation5], 1 }
 0x35e   :  { %861 = vsyncpa [#allocation5 + $0x1], 1 }

</bundles_post_ra>
